<compile_context>
chip_gen: v7x
topology: tpu7x:2x2x1
jax: 0.10.0
libtpu: 0.0.40
codegen_flags: <defaults>
</compile_context>

<pallas_src>
import functools

import jax
import jax.numpy as jnp
from jax import lax
from jax.experimental import pallas as pl
from jax.experimental.pallas import tpu as pltpu


def _self_attention_kernel(x_ref, w_ref, b_ref, o_ref, *, mxu_dtype, fused_w,
                           lane_dense_out):
    Bt, S, D = x_ref.shape
    scale = 1.0 / (float(D) ** 0.5)

    # ---- QKV projection: mxu_dtype operands into the MXU, f32 accumulation ----
    x2d = x_ref[...].reshape(Bt * S, D).astype(mxu_dtype)
    if fused_w:
        # D % 128 == 0: one (Bt*S, 3D) MXU stream; lane slices below are 128-aligned.
        qkv = jnp.dot(x2d, w_ref[...], preferred_element_type=jnp.float32) + b_ref[...]
        q, k, v = qkv[:, :D], qkv[:, D:2 * D], qkv[:, 2 * D:]
    else:
        # D % 128 != 0: avoid lane-crossing slices of a fused qkv value; three matmuls
        # against leading-dim-indexed weight views (no lane slicing of loaded values).
        q = jnp.dot(x2d, w_ref[0], preferred_element_type=jnp.float32) + b_ref[0]
        k = jnp.dot(x2d, w_ref[1], preferred_element_type=jnp.float32) + b_ref[1]
        v = jnp.dot(x2d, w_ref[2], preferred_element_type=jnp.float32) + b_ref[2]

    # Scale the (rows, D) side instead of the (S, S) scores; cast MXU operands only,
    # keep softmax statistics in f32 (important on v5e: no bf16 VPU/EUP).
    q = (q * scale).astype(mxu_dtype).reshape(Bt, S, D)
    k = k.astype(mxu_dtype).reshape(Bt, S, D)
    v = v.astype(mxu_dtype).reshape(Bt, S, D)

    # ---- scores = Q K^T, contracting K's last dim (no transpose / XLU work) ----
    scores = lax.dot_general(
        q, k, dimension_numbers=(((2,), (2,)), ((0,), (0,))),
        preferred_element_type=jnp.float32)                       # (Bt, S, S) f32

    # ---- numerically stable softmax (f32 stats) ----
    m = jnp.max(scores, axis=-1, keepdims=True)
    p = jnp.exp(scores - m)
    denom = jnp.sum(p, axis=-1, keepdims=True)
    attn = (p * pl.reciprocal(denom, approx=True)).astype(mxu_dtype)   # EUP slot

    # ---- output = attn @ V (batched), f32 accumulation ----
    out = lax.dot_general(
        attn, v, dimension_numbers=(((2,), (1,)), ((0,), (0,))),
        preferred_element_type=jnp.float32)                       # (Bt, S, D)
    out = out.astype(o_ref.dtype)

    if lane_dense_out:
        # Present a >=128-lane-wide slab so the HBM store is an unmasked vst.
        o_ref[...] = out.reshape(Bt, 1, S * D)
    else:
        o_ref[...] = out


def _pick_batch_block(B, S, D, *, x_itemsize, out_itemsize, w_bytes, vmem_budget):
    """Largest batch block that fits the VMEM budget, keeping >= 2 grid steps when the
    batch allows (both v7x TensorCores) and stopping once ~1024 MXU rows per step."""
    max_bt = B if B < 2 else B // 2          # keep grid length >= 2 when B >= 2
    candidates = [d for d in range(1, max_bt + 1) if B % d == 0]

    def vmem_estimate(bt):
        rows = bt * S
        io = 2 * rows * D * (x_itemsize + out_itemsize)      # double-buffered x / out blocks
        inter = rows * 3 * D * (4 + x_itemsize)              # f32 qkv + mxu-dtype q/k/v
        inter += rows * D * 4                                 # f32 attn @ V accumulator
        inter += 2 * bt * S * S * 4                           # f32 scores + exp(p)
        return io + inter + w_bytes

    fits = [d for d in candidates if vmem_estimate(d) <= vmem_budget] or [1]
    for d in fits:
        if d * S >= 1024:    # enough rows to fill the MXU / amortize ~0.35us per-step cost
            return d
    return fits[-1]          # otherwise: as big as the VMEM budget allows


def self_attention(x, wq, bq, wk, bk, wv, bv, *, mxu_dtype=jnp.bfloat16,
                   batch_block=None):
    """x: (B, S, D); w*: (D, D) stored as (in, out); b*: (D,).

    mxu_dtype: dtype streamed into the MXU (accumulation always f32).
               Pass None to keep everything in x.dtype (exact mode).
    """
    B, S, D = x.shape
    out_dtype = x.dtype
    if mxu_dtype is None:
        mxu_dtype = x.dtype
    mxu_dtype = jnp.dtype(mxu_dtype)

    fused_w = (D % 128 == 0)
    lane_dense_out = (D % 128 != 0) and ((S * D) % 128 == 0)

    # Weights in the MXU dtype (halves weight DMA + VMEM for f32 models); biases stay
    # f32 since they are added to the f32 accumulator (negligible cost).
    if fused_w:
        w = jnp.concatenate([wq, wk, wv], axis=1).astype(mxu_dtype)        # (D, 3D)
        b = jnp.concatenate([bq, bk, bv]).reshape(1, 3 * D).astype(jnp.float32)
    else:
        w = jnp.stack([wq, wk, wv]).astype(mxu_dtype)                      # (3, D, D)
        b = jnp.stack([bq, bk, bv]).reshape(3, 1, D).astype(jnp.float32)
    x_mxu = x.astype(mxu_dtype)

    # Per-generation VMEM sizing: v7x has 64 MiB/TC vs 128 MiB on v5e/v6e, and v5e's
    # default *scoped* limit is only 16 MiB, so size the block and the limit explicitly.
    try:
        vmem_cap = int(pltpu.get_tpu_info().vmem_capacity_bytes)
    except Exception:
        vmem_cap = 64 * 1024 * 1024          # smallest across v5e/v6e/v7x
    vmem_budget = int(0.55 * vmem_cap)
    vmem_limit = int(min(0.85 * vmem_cap, 128 * 1024 * 1024))

    w_bytes = int(w.size) * w.dtype.itemsize + int(b.size) * b.dtype.itemsize
    if batch_block is None:
        batch_block = _pick_batch_block(
            B, S, D,
            x_itemsize=mxu_dtype.itemsize,
            out_itemsize=jnp.dtype(out_dtype).itemsize,
            w_bytes=w_bytes, vmem_budget=vmem_budget)
    Bt = batch_block
    assert B % Bt == 0, "batch_block must divide the batch size"
    grid = (B // Bt,)

    cost = pl.CostEstimate(
        flops=2 * B * S * D * 3 * D + 4 * B * S * S * D,
        transcendentals=B * S * S,
        bytes_accessed=(int(x_mxu.size) * x_mxu.dtype.itemsize + w_bytes
                        + B * S * D * jnp.dtype(out_dtype).itemsize),
    )

    kernel = functools.partial(_self_attention_kernel,
                               mxu_dtype=mxu_dtype, fused_w=fused_w)

    def _run(use_lane_dense, single_buffer_consts):
        # Grid-constant weight/bias blocks: single-buffer them to reclaim one copy of
        # the weight in VMEM (buys a larger Bt; matters most on v7x's 64 MiB).
        const_kw = dict(pipeline_mode=pl.Buffered(1)) if single_buffer_consts else {}
        if fused_w:
            w_spec = pl.BlockSpec((D, 3 * D), lambda i: (0, 0), **const_kw)
            b_spec = pl.BlockSpec((1, 3 * D), lambda i: (0, 0), **const_kw)
        else:
            w_spec = pl.BlockSpec((3, D, D), lambda i: (0, 0, 0), **const_kw)
            b_spec = pl.BlockSpec((3, 1, D), lambda i: (0, 0, 0), **const_kw)
        # TODO(synk): consider pipeline_mode=pl.Buffered(3) on x_spec for tiny-D,
        #             mem-bound shapes where the x DMA is actually exposed.
        x_spec = pl.BlockSpec((Bt, S, D), lambda i: (i, 0, 0))
        if use_lane_dense:
            out_shape = jax.ShapeDtypeStruct((B, 1, S * D), out_dtype)
            out_spec = pl.BlockSpec((Bt, 1, S * D), lambda i: (i, 0, 0))
        else:
            out_shape = jax.ShapeDtypeStruct((B, S, D), out_dtype)
            out_spec = pl.BlockSpec((Bt, S, D), lambda i: (i, 0, 0))

        out = pl.pallas_call(
            functools.partial(kernel, lane_dense_out=use_lane_dense),
            out_shape=out_shape,
            grid_spec=pltpu.PrefetchScalarGridSpec(
                num_scalar_prefetch=0,
                grid=grid,
                in_specs=[x_spec, w_spec, b_spec],
                out_specs=out_spec,
            ),
            compiler_params=pltpu.CompilerParams(
                dimension_semantics=("parallel",),
                vmem_limit_bytes=vmem_limit,
            ),
            cost_estimate=cost,
        )(x_mxu, w, b)
        return out.reshape(B, S, D) if use_lane_dense else out

    try:
        return _run(lane_dense_out, True)
    except Exception:
        # Conservative fallback if this jax/Mosaic build rejects pl.Buffered(1) or the
        # lane-merging store reshape; semantics are identical, only layout differs.
        return _run(False, False)


def _orthogonal(key, n, gain=1.0, dtype=jnp.float32):
    """Deterministic orthogonal init (QR of a Gaussian), like nn.init.orthogonal_."""
    a = jax.random.normal(key, (n, n), dtype=jnp.float32)
    q, r = jnp.linalg.qr(a)
    d = jnp.sign(jnp.diagonal(r))
    q = q * d[None, :]
    return (gain * q).astype(dtype)


def reference(x, wq, bq, wk, bk, wv, bv):
    q = x @ wq + bq
    k = x @ wk + bk
    v = x @ wv + bv
    s = jnp.einsum("bqd,bkd->bqk", q, k) / (x.shape[-1] ** 0.5)
    w = jax.nn.softmax(s, axis=-1)
    return jnp.einsum("bqk,bkd->bqd", w, v)


if __name__ == "__main__":
    B, S, Z = 2, 8, 32
    key = jax.random.PRNGKey(0)
    kx, kq, kk, kv = jax.random.split(key, 4)

    x = jax.random.normal(kx, (B, S, Z), dtype=jnp.float32)

    # PyTorch Linear weight is (out, in) and applies x @ W.T; we store W.T = (in, out).
    # Orthogonality is preserved under transposition, so generating (in, out)
    # directly is equivalent in distribution.
    wq = _orthogonal(kq, Z)   # gain = 1.0 for Linear in weight_init
    wk = _orthogonal(kk, Z)
    wv = _orthogonal(kv, Z)
    bq = jnp.zeros((Z,), jnp.float32)
    bk = jnp.zeros((Z,), jnp.float32)
    bv = jnp.zeros((Z,), jnp.float32)

    ref = reference(x, wq, bq, wk, bk, wv, bv)

    # Default path: bf16 MXU operands, f32 accumulation / softmax stats.
    out = self_attention(x, wq, bq, wk, bk, wv, bv)
    out = jax.block_until_ready(out)
    assert out.shape == (B, S, Z)
    assert out.dtype == x.dtype
    # bf16 MXU operands + approx reciprocal -> ~1e-2-level absolute error budget.
    assert jnp.allclose(out, ref, atol=3e-2, rtol=3e-2), "mismatch vs reference (bf16)"

    # Exact-precision path (mxu_dtype=None keeps everything in x.dtype).
    out_exact = self_attention(x, wq, bq, wk, bk, wv, bv, mxu_dtype=None)
    out_exact = jax.block_until_ready(out_exact)
    # approx reciprocal (EUP) trades ~1e-4 relative precision for speed
    assert jnp.allclose(out_exact, ref, atol=5e-3, rtol=5e-3), "mismatch vs reference (f32)"

    print("KERNEL_OK")
</pallas_src>

<mosaic_0001>
module attributes {stable_mosaic.version = 11 : i64} {
  func.func @_self_attention_kernel(%arg0: i32, %arg1: memref<1x8x32xbf16, #tpu.memory_space<vmem>>, %arg2: memref<3x32x32xbf16, #tpu.memory_space<vmem>>, %arg3: memref<3x1x32xf32, #tpu.memory_space<vmem>>, %arg4: memref<1x1x256xf32, #tpu.memory_space<vmem>>) attributes {dimension_semantics = [#tpu.dimension_semantics<parallel>], iteration_bounds = array<i64: 2>, scalar_prefetch = 0 : i64, scratch_operands = 0 : i64, tpu.core_type = #tpu.core_type<tc>, window_params = [{transform_indices = @transform_0, window_bounds = array<i64: 1, 8, 32>}, {pipeline_mode = #tpu.pipeline_mode<synchronous>, transform_indices = @transform_1, window_bounds = array<i64: 3, 32, 32>}, {pipeline_mode = #tpu.pipeline_mode<synchronous>, transform_indices = @transform_2, window_bounds = array<i64: 3, 1, 32>}, {transform_indices = @transform_3, window_bounds = array<i64: 1, 1, 256>}]} {
    %c0 = arith.constant 0 : index
    %c0_0 = arith.constant 0 : index
    %c0_1 = arith.constant 0 : index
    %0 = vector.load %arg1[%c0, %c0_0, %c0_1] : memref<1x8x32xbf16, #tpu.memory_space<vmem>>, vector<1x8x32xbf16>
    %1 = vector.shape_cast %0 : vector<1x8x32xbf16> to vector<8x32xbf16>
    %c0_2 = arith.constant 0 : index
    %c0_3 = arith.constant 0 : index
    %c0_4 = arith.constant 0 : index
    %2 = vector.load %arg2[%c0_2, %c0_3, %c0_4] : memref<3x32x32xbf16, #tpu.memory_space<vmem>>, vector<1x32x32xbf16>
    %3 = vector.shape_cast %2 : vector<1x32x32xbf16> to vector<32x32xbf16>
    %cst = arith.constant dense<0.000000e+00> : vector<8x32xf32>
    %4 = tpu.matmul %1, %3, %cst {dimension_numbers = #tpu.dot_dimension_numbers<[1], [0], [0], [1], [0, 0, 1, 1], [], []>} : vector<8x32xbf16>, vector<32x32xbf16>, vector<8x32xf32> -> vector<8x32xf32>
    %c0_5 = arith.constant 0 : index
    %c0_6 = arith.constant 0 : index
    %c0_7 = arith.constant 0 : index
    %5 = vector.load %arg3[%c0_5, %c0_6, %c0_7] : memref<3x1x32xf32, #tpu.memory_space<vmem>>, vector<1x1x32xf32>
    %6 = vector.shape_cast %5 : vector<1x1x32xf32> to vector<1x32xf32>
    %7 = vector.broadcast %6 : vector<1x32xf32> to vector<8x32xf32>
    %8 = arith.addf %4, %7 : vector<8x32xf32>
    %c1 = arith.constant 1 : index
    %c0_8 = arith.constant 0 : index
    %c0_9 = arith.constant 0 : index
    %9 = vector.load %arg2[%c1, %c0_8, %c0_9] : memref<3x32x32xbf16, #tpu.memory_space<vmem>>, vector<1x32x32xbf16>
    %10 = vector.shape_cast %9 : vector<1x32x32xbf16> to vector<32x32xbf16>
    %cst_10 = arith.constant dense<0.000000e+00> : vector<8x32xf32>
    %11 = tpu.matmul %1, %10, %cst_10 {dimension_numbers = #tpu.dot_dimension_numbers<[1], [0], [0], [1], [0, 0, 1, 1], [], []>} : vector<8x32xbf16>, vector<32x32xbf16>, vector<8x32xf32> -> vector<8x32xf32>
    %c1_11 = arith.constant 1 : index
    %c0_12 = arith.constant 0 : index
    %c0_13 = arith.constant 0 : index
    %12 = vector.load %arg3[%c1_11, %c0_12, %c0_13] : memref<3x1x32xf32, #tpu.memory_space<vmem>>, vector<1x1x32xf32>
    %13 = vector.shape_cast %12 : vector<1x1x32xf32> to vector<1x32xf32>
    %14 = vector.broadcast %13 : vector<1x32xf32> to vector<8x32xf32>
    %15 = arith.addf %11, %14 : vector<8x32xf32>
    %c2 = arith.constant 2 : index
    %c0_14 = arith.constant 0 : index
    %c0_15 = arith.constant 0 : index
    %16 = vector.load %arg2[%c2, %c0_14, %c0_15] : memref<3x32x32xbf16, #tpu.memory_space<vmem>>, vector<1x32x32xbf16>
    %17 = vector.shape_cast %16 : vector<1x32x32xbf16> to vector<32x32xbf16>
    %cst_16 = arith.constant dense<0.000000e+00> : vector<8x32xf32>
    %18 = tpu.matmul %1, %17, %cst_16 {dimension_numbers = #tpu.dot_dimension_numbers<[1], [0], [0], [1], [0, 0, 1, 1], [], []>} : vector<8x32xbf16>, vector<32x32xbf16>, vector<8x32xf32> -> vector<8x32xf32>
    %c2_17 = arith.constant 2 : index
    %c0_18 = arith.constant 0 : index
    %c0_19 = arith.constant 0 : index
    %19 = vector.load %arg3[%c2_17, %c0_18, %c0_19] : memref<3x1x32xf32, #tpu.memory_space<vmem>>, vector<1x1x32xf32>
    %20 = vector.shape_cast %19 : vector<1x1x32xf32> to vector<1x32xf32>
    %21 = vector.broadcast %20 : vector<1x32xf32> to vector<8x32xf32>
    %22 = arith.addf %18, %21 : vector<8x32xf32>
    %cst_20 = arith.constant 0.176776692 : f32
    %23 = vector.broadcast %cst_20 : f32 to vector<8x32xf32>
    %24 = arith.mulf %8, %23 : vector<8x32xf32>
    %25 = arith.truncf %24 : vector<8x32xf32> to vector<8x32xbf16>
    %26 = vector.shape_cast %25 : vector<8x32xbf16> to vector<1x8x32xbf16>
    %27 = arith.truncf %15 : vector<8x32xf32> to vector<8x32xbf16>
    %28 = vector.shape_cast %27 : vector<8x32xbf16> to vector<1x8x32xbf16>
    %29 = arith.truncf %22 : vector<8x32xf32> to vector<8x32xbf16>
    %30 = vector.shape_cast %29 : vector<8x32xbf16> to vector<1x8x32xbf16>
    %cst_21 = arith.constant dense<0.000000e+00> : vector<1x8x8xf32>
    %31 = tpu.matmul %26, %28, %cst_21 {dimension_numbers = #tpu.dot_dimension_numbers<[2], [2], [1], [1], [0, 0, 0, 1, 1, 1], [0], [0]>} : vector<1x8x32xbf16>, vector<1x8x32xbf16>, vector<1x8x8xf32> -> vector<1x8x8xf32>
    %cst_22 = arith.constant dense<0xFF800000> : vector<1x8xf32>
    %32 = vector.multi_reduction <maximumf>, %31, %cst_22 [2] : vector<1x8x8xf32> to vector<1x8xf32>
    %33 = vector.shape_cast %32 : vector<1x8xf32> to vector<1x8x1xf32>
    %34 = vector.broadcast %33 : vector<1x8x1xf32> to vector<1x8x8xf32>
    %35 = arith.subf %31, %34 : vector<1x8x8xf32>
    %36 = math.exp %35 : vector<1x8x8xf32>
    %cst_23 = arith.constant dense<0.000000e+00> : vector<1x8xf32>
    %37 = vector.multi_reduction <add>, %36, %cst_23 [2] : vector<1x8x8xf32> to vector<1x8xf32>
    %38 = vector.shape_cast %37 : vector<1x8xf32> to vector<1x8x1xf32>
    %39 = tpu.reciprocal %38 {approx = true} : vector<1x8x1xf32> -> vector<1x8x1xf32>
    %40 = vector.broadcast %39 : vector<1x8x1xf32> to vector<1x8x8xf32>
    %41 = arith.mulf %36, %40 : vector<1x8x8xf32>
    %42 = arith.truncf %41 : vector<1x8x8xf32> to vector<1x8x8xbf16>
    %cst_24 = arith.constant dense<0.000000e+00> : vector<1x8x32xf32>
    %43 = tpu.matmul %42, %30, %cst_24 {dimension_numbers = #tpu.dot_dimension_numbers<[2], [1], [1], [2], [0, 0, 0, 1, 1, 2], [0], [0]>} : vector<1x8x8xbf16>, vector<1x8x32xbf16>, vector<1x8x32xf32> -> vector<1x8x32xf32>
    %44 = vector.shape_cast %43 : vector<1x8x32xf32> to vector<1x1x256xf32>
    %c0_25 = arith.constant 0 : index
    %c0_26 = arith.constant 0 : index
    %c0_27 = arith.constant 0 : index
    %45 = vector.load %arg4[%c0_25, %c0_26, %c0_27] : memref<1x1x256xf32, #tpu.memory_space<vmem>>, vector<1x1x256xf32>
    tpu.vector_store %arg4[%c0_25, %c0_26, %c0_27], %44 {strides = array<i32>} : memref<1x1x256xf32, #tpu.memory_space<vmem>>, vector<1x1x256xf32>,
    return
  }
  func.func @transform_0(%arg0: i32) -> (i32, i32, i32) {
    %c0_i32 = arith.constant 0 : i32
    %c0_i32_0 = arith.constant 0 : i32
    %c0_i32_1 = arith.constant 0 : i32
    return %arg0, %c0_i32, %c0_i32_0 : i32, i32, i32
  }
  func.func @transform_1(%arg0: i32) -> (i32, i32, i32) {
    %c0_i32 = arith.constant 0 : i32
    %c0_i32_0 = arith.constant 0 : i32
    %c0_i32_1 = arith.constant 0 : i32
    %c0_i32_2 = arith.constant 0 : i32
    return %c0_i32, %c0_i32_0, %c0_i32_1 : i32, i32, i32
  }
  func.func @transform_2(%arg0: i32) -> (i32, i32, i32) {
    %c0_i32 = arith.constant 0 : i32
    %c0_i32_0 = arith.constant 0 : i32
    %c0_i32_1 = arith.constant 0 : i32
    %c0_i32_2 = arith.constant 0 : i32
    return %c0_i32, %c0_i32_0, %c0_i32_1 : i32, i32, i32
  }
  func.func @transform_3(%arg0: i32) -> (i32, i32, i32) {
    %c0_i32 = arith.constant 0 : i32
    %c0_i32_0 = arith.constant 0 : i32
    %c0_i32_1 = arith.constant 0 : i32
    return %arg0, %c0_i32, %c0_i32_0 : i32, i32, i32
  }
}

module attributes {stable_mosaic.version = 11 : i64} {
  func.func @_self_attention_kernel(%arg0: i32, %arg1: memref<1x8x32xbf16, #tpu.memory_space<vmem>>, %arg2: memref<3x32x32xbf16, #tpu.memory_space<vmem>>, %arg3: memref<3x1x32xf32, #tpu.memory_space<vmem>>, %arg4: memref<1x8x32xf32, #tpu.memory_space<vmem>>) attributes {dimension_semantics = [#tpu.dimension_semantics<parallel>], iteration_bounds = array<i64: 2>, scalar_prefetch = 0 : i64, scratch_operands = 0 : i64, tpu.core_type = #tpu.core_type<tc>, window_params = [{transform_indices = @transform_0, window_bounds = array<i64: 1, 8, 32>}, {pipeline_mode = #tpu.pipeline_mode<synchronous>, transform_indices = @transform_1, window_bounds = array<i64: 3, 32, 32>}, {pipeline_mode = #tpu.pipeline_mode<synchronous>, transform_indices = @transform_2, window_bounds = array<i64: 3, 1, 32>}, {transform_indices = @transform_3, window_bounds = array<i64: 1, 8, 32>}]} {
    %c0 = arith.constant 0 : index
    %c0_0 = arith.constant 0 : index
    %c0_1 = arith.constant 0 : index
    %0 = vector.load %arg1[%c0, %c0_0, %c0_1] : memref<1x8x32xbf16, #tpu.memory_space<vmem>>, vector<1x8x32xbf16>
    %1 = vector.shape_cast %0 : vector<1x8x32xbf16> to vector<8x32xbf16>
    %c0_2 = arith.constant 0 : index
    %c0_3 = arith.constant 0 : index
    %c0_4 = arith.constant 0 : index
    %2 = vector.load %arg2[%c0_2, %c0_3, %c0_4] : memref<3x32x32xbf16, #tpu.memory_space<vmem>>, vector<1x32x32xbf16>
    %3 = vector.shape_cast %2 : vector<1x32x32xbf16> to vector<32x32xbf16>
    %cst = arith.constant dense<0.000000e+00> : vector<8x32xf32>
    %4 = tpu.matmul %1, %3, %cst {dimension_numbers = #tpu.dot_dimension_numbers<[1], [0], [0], [1], [0, 0, 1, 1], [], []>} : vector<8x32xbf16>, vector<32x32xbf16>, vector<8x32xf32> -> vector<8x32xf32>
    %c0_5 = arith.constant 0 : index
    %c0_6 = arith.constant 0 : index
    %c0_7 = arith.constant 0 : index
    %5 = vector.load %arg3[%c0_5, %c0_6, %c0_7] : memref<3x1x32xf32, #tpu.memory_space<vmem>>, vector<1x1x32xf32>
    %6 = vector.shape_cast %5 : vector<1x1x32xf32> to vector<1x32xf32>
    %7 = vector.broadcast %6 : vector<1x32xf32> to vector<8x32xf32>
    %8 = arith.addf %4, %7 : vector<8x32xf32>
    %c1 = arith.constant 1 : index
    %c0_8 = arith.constant 0 : index
    %c0_9 = arith.constant 0 : index
    %9 = vector.load %arg2[%c1, %c0_8, %c0_9] : memref<3x32x32xbf16, #tpu.memory_space<vmem>>, vector<1x32x32xbf16>
    %10 = vector.shape_cast %9 : vector<1x32x32xbf16> to vector<32x32xbf16>
    %cst_10 = arith.constant dense<0.000000e+00> : vector<8x32xf32>
    %11 = tpu.matmul %1, %10, %cst_10 {dimension_numbers = #tpu.dot_dimension_numbers<[1], [0], [0], [1], [0, 0, 1, 1], [], []>} : vector<8x32xbf16>, vector<32x32xbf16>, vector<8x32xf32> -> vector<8x32xf32>
    %c1_11 = arith.constant 1 : index
    %c0_12 = arith.constant 0 : index
    %c0_13 = arith.constant 0 : index
    %12 = vector.load %arg3[%c1_11, %c0_12, %c0_13] : memref<3x1x32xf32, #tpu.memory_space<vmem>>, vector<1x1x32xf32>
    %13 = vector.shape_cast %12 : vector<1x1x32xf32> to vector<1x32xf32>
    %14 = vector.broadcast %13 : vector<1x32xf32> to vector<8x32xf32>
    %15 = arith.addf %11, %14 : vector<8x32xf32>
    %c2 = arith.constant 2 : index
    %c0_14 = arith.constant 0 : index
    %c0_15 = arith.constant 0 : index
    %16 = vector.load %arg2[%c2, %c0_14, %c0_15] : memref<3x32x32xbf16, #tpu.memory_space<vmem>>, vector<1x32x32xbf16>
    %17 = vector.shape_cast %16 : vector<1x32x32xbf16> to vector<32x32xbf16>
    %cst_16 = arith.constant dense<0.000000e+00> : vector<8x32xf32>
    %18 = tpu.matmul %1, %17, %cst_16 {dimension_numbers = #tpu.dot_dimension_numbers<[1], [0], [0], [1], [0, 0, 1, 1], [], []>} : vector<8x32xbf16>, vector<32x32xbf16>, vector<8x32xf32> -> vector<8x32xf32>
    %c2_17 = arith.constant 2 : index
    %c0_18 = arith.constant 0 : index
    %c0_19 = arith.constant 0 : index
    %19 = vector.load %arg3[%c2_17, %c0_18, %c0_19] : memref<3x1x32xf32, #tpu.memory_space<vmem>>, vector<1x1x32xf32>
    %20 = vector.shape_cast %19 : vector<1x1x32xf32> to vector<1x32xf32>
    %21 = vector.broadcast %20 : vector<1x32xf32> to vector<8x32xf32>
    %22 = arith.addf %18, %21 : vector<8x32xf32>
    %cst_20 = arith.constant 0.176776692 : f32
    %23 = vector.broadcast %cst_20 : f32 to vector<8x32xf32>
    %24 = arith.mulf %8, %23 : vector<8x32xf32>
    %25 = arith.truncf %24 : vector<8x32xf32> to vector<8x32xbf16>
    %26 = vector.shape_cast %25 : vector<8x32xbf16> to vector<1x8x32xbf16>
    %27 = arith.truncf %15 : vector<8x32xf32> to vector<8x32xbf16>
    %28 = vector.shape_cast %27 : vector<8x32xbf16> to vector<1x8x32xbf16>
    %29 = arith.truncf %22 : vector<8x32xf32> to vector<8x32xbf16>
    %30 = vector.shape_cast %29 : vector<8x32xbf16> to vector<1x8x32xbf16>
    %cst_21 = arith.constant dense<0.000000e+00> : vector<1x8x8xf32>
    %31 = tpu.matmul %26, %28, %cst_21 {dimension_numbers = #tpu.dot_dimension_numbers<[2], [2], [1], [1], [0, 0, 0, 1, 1, 1], [0], [0]>} : vector<1x8x32xbf16>, vector<1x8x32xbf16>, vector<1x8x8xf32> -> vector<1x8x8xf32>
    %cst_22 = arith.constant dense<0xFF800000> : vector<1x8xf32>
    %32 = vector.multi_reduction <maximumf>, %31, %cst_22 [2] : vector<1x8x8xf32> to vector<1x8xf32>
    %33 = vector.shape_cast %32 : vector<1x8xf32> to vector<1x8x1xf32>
    %34 = vector.broadcast %33 : vector<1x8x1xf32> to vector<1x8x8xf32>
    %35 = arith.subf %31, %34 : vector<1x8x8xf32>
    %36 = math.exp %35 : vector<1x8x8xf32>
    %cst_23 = arith.constant dense<0.000000e+00> : vector<1x8xf32>
    %37 = vector.multi_reduction <add>, %36, %cst_23 [2] : vector<1x8x8xf32> to vector<1x8xf32>
    %38 = vector.shape_cast %37 : vector<1x8xf32> to vector<1x8x1xf32>
    %39 = tpu.reciprocal %38 {approx = true} : vector<1x8x1xf32> -> vector<1x8x1xf32>
    %40 = vector.broadcast %39 : vector<1x8x1xf32> to vector<1x8x8xf32>
    %41 = arith.mulf %36, %40 : vector<1x8x8xf32>
    %42 = arith.truncf %41 : vector<1x8x8xf32> to vector<1x8x8xbf16>
    %cst_24 = arith.constant dense<0.000000e+00> : vector<1x8x32xf32>
    %43 = tpu.matmul %42, %30, %cst_24 {dimension_numbers = #tpu.dot_dimension_numbers<[2], [1], [1], [2], [0, 0, 0, 1, 1, 2], [0], [0]>} : vector<1x8x8xbf16>, vector<1x8x32xbf16>, vector<1x8x32xf32> -> vector<1x8x32xf32>
    %c0_25 = arith.constant 0 : index
    %c0_26 = arith.constant 0 : index
    %c0_27 = arith.constant 0 : index
    %44 = vector.load %arg4[%c0_25, %c0_26, %c0_27] : memref<1x8x32xf32, #tpu.memory_space<vmem>>, vector<1x8x32xf32>
    tpu.vector_store %arg4[%c0_25, %c0_26, %c0_27], %43 {strides = array<i32>} : memref<1x8x32xf32, #tpu.memory_space<vmem>>, vector<1x8x32xf32>,
    return
  }
  func.func @transform_0(%arg0: i32) -> (i32, i32, i32) {
    %c0_i32 = arith.constant 0 : i32
    %c0_i32_0 = arith.constant 0 : i32
    %c0_i32_1 = arith.constant 0 : i32
    return %arg0, %c0_i32, %c0_i32_0 : i32, i32, i32
  }
  func.func @transform_1(%arg0: i32) -> (i32, i32, i32) {
    %c0_i32 = arith.constant 0 : i32
    %c0_i32_0 = arith.constant 0 : i32
    %c0_i32_1 = arith.constant 0 : i32
    %c0_i32_2 = arith.constant 0 : i32
    return %c0_i32, %c0_i32_0, %c0_i32_1 : i32, i32, i32
  }
  func.func @transform_2(%arg0: i32) -> (i32, i32, i32) {
    %c0_i32 = arith.constant 0 : i32
    %c0_i32_0 = arith.constant 0 : i32
    %c0_i32_1 = arith.constant 0 : i32
    %c0_i32_2 = arith.constant 0 : i32
    return %c0_i32, %c0_i32_0, %c0_i32_1 : i32, i32, i32
  }
  func.func @transform_3(%arg0: i32) -> (i32, i32, i32) {
    %c0_i32 = arith.constant 0 : i32
    %c0_i32_0 = arith.constant 0 : i32
    %c0_i32_1 = arith.constant 0 : i32
    return %arg0, %c0_i32, %c0_i32_0 : i32, i32, i32
  }
}

</mosaic_0001>

<bundles_post_ra>
// kernel: tpu_custom_call.1
= control target key start
LH: loop header
LB: loop body
LE: loop exit
PB: predicated region body
PF: predicated region fallthrough
CT: control target
= control target key end

     0   :  { %8 = vsyncpa [#allocation3], 0  ;;  %s1271_s0 = inlined_call_operand.hbm [shape: bf16[2,8,32], index: 0, kind: input, shape index: {}]   ;;  %s1272_s1 = inlined_call_operand.hbm [shape: bf16[3,32,32], index: 1, kind: input, shape index: {}]   ;;  %s1273_s2 = inlined_call_operand.vmem [shape: f32[3,1,32], index: 2, kind: input, shape index: {}]   ;;  %s1274_s3 = inlined_call_operand.hbm [shape: f32[2,1,256], index: 3, kind: output, shape index: {}]  }
   0x1   :  { %10 = vsyncpa [#allocation3 + $0x1], 0 }
   0x2   :  { %11 = vsyncpa [#allocation6], 0 }
   0x3   :  { %12 = vsyncpa [#allocation4], 0 }
   0x4   :  { %14 = vsyncpa [#allocation4 + $0x1], 0  ;;  %s1030_s12 = smov 0   ;;  %s1032_s13 = smov 0  }
   0x5   :  { %s1034_s14 = smov 0   ;;  %s1036_s15 = smov 0  }
   0x6 LB: > { %s1051_s16 = sadd.s32 4294967295, %s995_s15   ;;  %s709_s17 = sadd.s32 4294967294, %s995_s15   ;;  %s995_s15 = sphi %s1036_s15, %s1294_s15   ;;  %s991_s14 = sphi %s1034_s14, %s1293_s14   ;;  %s987_s13 = sphi %s1032_s13, %s1292_s13   ;;  %s983_s12 = sphi %s1030_s12, %s1291_s12  }
   0x7   : > { %p40_p0 = scmp.ne.s32.totalorder %s987_s13, %s983_s12  ;;  %p1275_p1 = scmp.eq.s32.totalorder %s1051_s16, 0 }
   0x8   : > { %p112_p3 = scmp.eq.s32.totalorder %s709_s17, 1  ;;  %p710_p5 = scmp.ge.s32.totalorder %s995_s15, 1 }
   0x9   : > { %p1060_p4 = por %p1275_p1, %p40_p0  ;;  %p119_p7 = scmp.lt.s32.totalorder %s995_s15, 3 }
   0xa   : > { %p1065_p6 = por %p112_p3, %p40_p0  ;;  %s997_s21 = smov [#allocation5]  }
   0xb   : > { %s1278_s18 = scalar_select %p1060_p4, 1, 0 }
   0xc   : > { %s1279_s19 = scalar_select %p1065_p6, 1, 0 }
   0xd   : > { %p1070_p8 = pnand %p710_p5, %p119_p7  ;;  %s131_s22 = sshll.u32 %s997_s21, 4  ;;  %s1074_s22 = int_to_ptr.vmem [resolvable:$true] %s131_s22 }
   0xe   : > { %s1086_s24 = sadd.s32 1, %s995_s15   ;;  %s27_s25 = sadd.s32 1, %s991_s14 }
   0xf   : > { %s1280_s20 = scalar_select %p1070_p8, 1, 0 }
  0x10   : > { %p798_p9 = pneg %p1070_p8  ;;  %s24_s26 = ssub.s32 %s995_s15, %s1086_s24 }
  0x11   : > { %s867_s29 = scalar_lea.hbm %s1272_s1, 768 }
  0x12   : > { %p1081_p11 = pnand %p798_p9, %p1275_p1  ;;  %p868_p12 = scmp.ne.s32.totalorder %s1272_s1, %s867_s29 }
  0x13   : > { %p874_p5 = scmp.lt.u32.totalorder %s867_s29, %s1272_s1 }
  0x14   : > { %p869_p13 = pneg %p1081_p11 }
  0x16   : > { %p870_p0 = pnand %p869_p13, %p868_p12 }
  0x18   : > { %p871_p3 = pneg %p870_p0 }
  0x1a   : > { %p876_p7 = pnand %p874_p5, %p871_p3 }
  0x1c   : > { %879 = shalt.err (!%p876_p7)
}
  0x1d   : > { %s880_s7 = scalar_lea.vmem %s1074_s22, 768  ;;  %p888_p2 = scmp.lt.s32.totalorder %s1074_s22, %s1074_s22 }
  0x1e   : > { %p881_p9 = scmp.ne.s32.totalorder %s1074_s22, %s880_s7  ;;  %p889_p6 = scmp.lt.s32.totalorder %s880_s7, %s880_s7 }
  0x20   : > { %p883_p10 = pnand %p881_p9, %p869_p13  ;;  %p890_p4 = por %p889_p6, %p888_p2 }
  0x22   : > { %p884_p1 = pneg %p883_p10 }
  0x24   : > { %p891_p8 = pnand %p890_p4, %p884_p1 }
  0x26   : > { %894 = shalt.err (!%p891_p8)
}
  0x27   : > { %s998_s8 = smov 64   ;;  %s999_s9 = smov 4  }
  0x28   : > { %801 = dma.hbm_to_vmem [thread:$0]  (!%p1081_p11), %s1272_s1, 768, %s1074_s22, [#allocation6], %s998_s8, %s998_s8, %s999_s9  }
  0x29   : > { %p25_p2 = scmp.eq.s32.totalorder %s24_s26, 0  ;;  %p34_p1 = scmp.ne.s32.totalorder %s991_s14, %s987_s13 }
  0x2a   : > { %p35_p4 = scmp.eq.s32.totalorder %s995_s15, 0  ;;  %p811_p6 = scmp.lt.s32.totalorder %s995_s15, 2 }
  0x2b   : > { %s1117_s17 = scalar_select %p25_p2, %s991_s14, %s27_s25  }
  0x2c   : > { %p36_p8 = por %p35_p4, %p34_p1  ;;  %p1282_p10 = scmp.eq.s32.totalorder %s1051_s16, 1 }
  0x2d   : > { %s148_s27 = sand.u32 1, %s991_s14   ;;  %s714_s28 = sshll.u32 %s995_s15, 6 }
  0x2e   : > { %p1121_p12 = por %p1282_p10, %p34_p1  ;;  %s713_s29 = sshll.u32 %s148_s27, 2 }
  0x2f   : > { %s1130_s4 = scalar_lea.hbm %s1271_s0, %s714_s28  ;;  %s152_s22 = scalar_lea.vmem [#allocation2], %s713_s29 }
  0x30   : > { %s159_s25 = sshll.u32 %s152_s22, 4  ;;  %p1132_p11 = pnand %p811_p6, %p36_p8  ;;  %s1136_s25 = int_to_ptr.vmem [resolvable:$true] %s159_s25 }
  0x31   : > { %s149_s5 = scalar_lea.sflag [#allocation3], %s148_s27  ;;  %s895_s6 = scalar_lea.hbm %s1130_s4, 64 }
  0x32   : > { %p896_p13 = scmp.ne.s32.totalorder %s1130_s4, %s895_s6  ;;  %p897_p0 = pneg %p1132_p11 }
  0x33   : > { %s900_s9 = scalar_lea.hbm %s1271_s0, 128  ;;  %p901_p7 = scmp.lt.u32.totalorder %s1130_s4, %s1271_s0 }
  0x34   : > { %p898_p3 = pnand %p897_p0, %p896_p13  ;;  %p902_p9 = scmp.lt.u32.totalorder %s900_s9, %s895_s6 }
  0x35   : > { %p904_p1 = scmp.lt.u32.totalorder %s895_s6, %s1130_s4 }
  0x36   : > { %p899_p5 = pneg %p898_p3  ;;  %p903_p2 = por %p902_p9, %p901_p7 }
  0x38   : > { %p905_p4 = por %p904_p1, %p903_p2 }
  0x3a   : > { %p906_p6 = pnand %p905_p4, %p899_p5 }
  0x3c   : > { %909 = shalt.err (!%p906_p6)
}
  0x3d   : > { %s910_s27 = scalar_lea.vmem %s1136_s25, 64  ;;  %s1000_s28 = smov [#allocation2]  }
  0x3e   : > { %p911_p8 = scmp.ne.s32.totalorder %s1136_s25, %s910_s27  ;;  %s915_s29 = sshll.u32 %s1000_s28, 4  ;;  %s916_s29 = int_to_ptr.vmem [resolvable:$false] %s915_s29 }
  0x3f   : > { %s917_s23 = scalar_lea.vmem %s916_s29, 128  ;;  %p918_p3 = scmp.lt.s32.totalorder %s1136_s25, %s916_s29 }
  0x40   : > { %p913_p10 = pnand %p911_p8, %p897_p0  ;;  %p919_p7 = scmp.lt.s32.totalorder %s917_s23, %s910_s27 }
  0x42   : > { %p914_p13 = pneg %p913_p10  ;;  %p920_p9 = por %p919_p7, %p918_p3 }
  0x44   : > { %p921_p2 = pnand %p920_p9, %p914_p13 }
  0x46   : > { %924 = shalt.err (!%p921_p2)
}
  0x47   : > { %805 = dma.hbm_to_vmem [thread:$0]  (!%p1132_p11), %s1130_s4, 64, %s1136_s25, %s149_s5  }
  0x48   : > { %p1285_p5 = scmp.ne.s32.totalorder %s1280_s20, 0 }
  0x49   : > { %s1166_s30 = sand.u32 (!%p1285_p5), 1, %s987_s13   ;;  %p1286_p0 = scmp.ne.s32.totalorder (!%p1285_p5), %s1278_s18, 0 }
  0x4a   : > { %168 = sbr.rel (%p1285_p5) target bundleno = 1217 (0x4c1), region = 32  ;;  %s716_s22 = sshll.u32 (!%p1285_p5), %s1166_s30, 2 }
  0x4b   : > { %s171_s6 = scalar_lea.sflag (!%p1285_p5), [#allocation3], %s1166_s30  ;;  %s174_s7 = scalar_lea.vmem (!%p1285_p5), [#allocation2], %s716_s22 }
  0x51   : > { %970 = dma.done.wait (%p1286_p0), %s171_s6, 64  }
  0x52   : > { %972 = vsyncadd (%p1286_p0), %s171_s6, 4294967232  ;;  %p1287_p1 = scmp.eq.s32.totalorder %s1051_s16, 0 }
  0x54   : > { %974 = dma.done.wait (%p1287_p1), [#allocation6], 768   ;;  %p1288_p11 = pmov %p1287_p1 }
  0x55   : > { %v1001_v0 = vmov 0.0   ;;  %vm1002_vm0 = vmmov 0   ;;  %v857_v1 = vld [vmem:[#allocation5 + $0x10] sm:$0xff]   ;;  %v858_v2 = vld [vmem:[#allocation5] sm:$0xff]   ;;  %v859_v3 = vld [vmem:[#allocation5 + $0x18] sm:$0xff]   ;;  %vm226_vm1 = vcmask 261120   ;;  %v514_v48 = vlaneseq }
  0x56   : > { %976 = vsyncadd (%p1288_p11), [#allocation6], 4294966528  ;;  %762 = vmatprep.subr.bf16.mxu1 %v1001_v0  ;;  %754 = vmatprep.subr.bf16.mxu0 %v1001_v0  ;;  %v860_v4 = vld [vmem:[#allocation5 + $0x8] sm:$0xff]   ;;  %v202_v5 = vld [vmem:[%s174_s7] sm:$0xf]  ;;  %vm450_vm2 = vcmask 64512  }
  0x57   : > { %766 = vmatprep.mubr.msk.bf16.mxu1 %vm1002_vm0, %v1001_v0  ;;  %758 = vmatprep.mubr.msk.bf16.mxu0 %vm1002_vm0, %v1001_v0  ;;  %v724_v6 = vld [vmem:[%s1273_s2 + $0x1] ss:$0 sm:$0xff]  ;;  %v719_v7 = vld [vmem:[%s1273_s2] ss:$0 sm:$0xff]  ;;  %v861_v22 = vld [vmem:[#allocation5 + $0x20] sm:$0xff]   ;;  %vm466_vm3 = vcmask 1043456  }
  0x58   : > { %763 = vmatpush3.bf16.msra.mxu1 %v857_v1  ;;  %755 = vmatpush3.bf16.msra.mxu0 %v858_v2  ;;  %v862_v23 = vld [vmem:[#allocation5 + $0x28] sm:$0xff]   ;;  %v729_v37 = vld [vmem:[%s1273_s2 + $0x2] ss:$0 sm:$0xff]  ;;  %v1003_v46 = vmov 1983009808   ;;  %v515_v52 = vshrl.u32 %v514_v48, 7 }
  0x59   : > { %764 = vmatprep.subr.bf16.mxu1 %v1001_v0  ;;  %756 = vmatprep.subr.bf16.mxu0 %v1001_v0  ;;  %v512_v47 = vunpack.c.l.s4 %v1003_v46  ;;  %v1004_v49 = vmov 1934713408   ;;  %s1005_s8 = smov 32   ;;  %s1006_s9 = smov 64   ;;  %vm584_vm4 = vcmask 523264   ;;  %vm586_vm5 = vcmask 785408  }
  0x5a   : > { %v527_v50 = vunpack.c.l.s4 %v1004_v49  ;;  %s1007_s10 = smov 96   ;;  %s718_s11 = sshll.u32 %s1166_s30, 1  ;;  %vm611_vm6 = vcmp.lt.s32.totalorder %v514_v48, 256 }
  0x5b   : > { %v513_v51 = vunpack.c.0.s8 %v512_v47  ;;  %s740_s27 = sshll.u32 %s1051_s16, 5  ;;  %s200_s28 = scalar_lea.vmem [#allocation7], %s718_s11 }
  0x5c   : > { %765 = vmatpush3.bf16.msra.mxu1 %v859_v3  ;;  %757 = vmatpush3.bf16.msra.mxu0 %v860_v4  ;;  %v528_v53 = vunpack.c.0.s8 %v527_v50  ;;  %s629_s29 = sshll.u32 %s200_s28, 4  ;;  %s1227_s6 = scalar_lea.hbm %s1274_s3, %s740_s27  ;;  %s1229_s29 = int_to_ptr.vmem [resolvable:$true] %s629_s29 }
  0x5d   : > { %778 = vmatprep.subr.bf16.mxu1 %v1001_v0  ;;  %770 = vmatprep.subr.bf16.mxu0 %v1001_v0  ;;  %v516_v54 = vsub.s32 %v513_v51, %v515_v52  ;;  %s615_s7 = scalar_lea.sflag [#allocation4], %s1166_s30  ;;  %s925_s18 = scalar_lea.vmem %s1229_s29, 32 }
  0x5e   : > { %v531_v55 = vsub.s32 %v528_v53, %v515_v52  ;;  %p926_p4 = scmp.ne.s32.totalorder %s1229_s29, %s925_s18  ;;  %s1009_s16 = smov [#allocation7]  }
  0x5f   : > { %767 = vmatmul.mubr.msk.bf16.vlgmr.msra.gmra.mrb[0].mxu1 %vm226_vm1, %v202_v5  ;;  %759 = vmatmul.mubr.msk.bf16.vlgmr.msra.gmra.mrb[0].mxu0 %vm226_vm1, %v202_v5  ;;  %s929_s20 = sshll.u32 %s1009_s16, 4  ;;  %s930_s20 = int_to_ptr.vmem [resolvable:$false] %s929_s20 }
  0x60   : > { %780 = vmatprep.mubr.msk.bf16.mxu1 %vm1002_vm0, %v1001_v0  ;;  %774 = vmatprep.mubr.msk.bf16.mxu0 %vm1002_vm0, %v1001_v0  ;;  %p927_p6 = pnand %p926_p4, %p1121_p12  ;;  %s931_s4 = scalar_lea.vmem %s930_s20, 64 }
  0x61   : > { %771 = vmatpush3.bf16.msra.mxu0 %v861_v22  ;;  %p932_p10 = scmp.lt.s32.totalorder %s1229_s29, %s930_s20  ;;  %p933_p13 = scmp.lt.s32.totalorder %s931_s4, %s925_s18 }
  0x62   : > { %772 = vmatprep.subr.bf16.mxu0 %v1001_v0  ;;  %p928_p8 = pneg %p927_p6 }
  0x63   : > { %p934_p3 = por %p933_p13, %p932_p10 }
  0x65   : > { %773 = vmatpush3.bf16.msra.mxu0 %v862_v23  ;;  %p935_p7 = pnand %p934_p3, %p928_p8 }
  0x66   : > { %784 = vmatprep.subr.bf16.mxu0 %v1001_v0 }
  0x68   : > { %775 = vmatmul.mubr.msk.bf16.vlgmr.msra.gmra.mrb[4].mxu0 %vm226_vm1, %v202_v5 }
  0x69   : > { %786 = vmatprep.mubr.msk.bf16.mxu0 %vm1002_vm0, %v1001_v0 }
 0x132   : > { %v329_v8 = vpop.f32.mrb[0].mxu1  ;;  %v264_v11 = vpop.f32.mrb[0].mxu0 }
 0x133   : > { %v330_v9 = vadd.f32 %v724_v6, %v329_v8  ;;  %v768_v10 = vpop.f32.mrb[1].mxu1  ;;  %v265_v13 = vadd.f32 %v719_v7, %v264_v11  ;;  %v760_v14 = vpop.f32.mrb[1].mxu0 }
 0x134   : > { %v332_v12 = vpop.f32.mrb[2].mxu1  ;;  %v267_v17 = vpop.f32.mrb[2].mxu0 }
 0x135   : > { %v402_v15 = vpack.c.bf16 %v330_v9, %v330_v9  ;;  %v769_v16 = vpop.f32.mrb[3].mxu1  ;;  %v761_v18 = vpop.f32.mrb[3].mxu0  ;;  %v400_v20 = vmul.f32 0.17677669, %v265_v13  ;;  %v1008_v13 = vmov 1966171168  }
 0x136   : > { %v595_v14 = vunpack.c.l.s4 %v1008_v13 }
 0x137   : > { %v408_v19 = vsel %vm226_vm1, %v402_v15, 0  ;;  %v401_v21 = vpack.c.bf16 %v400_v20, %v400_v20 }
 0x138   : > { %779 = vmatpush3.bf16.xpose.msra.mxu1 %v408_v19  ;;  %v596_v16 = vunpack.c.0.s8 %v595_v14 }
 0x13b   : > { %v394_v34 = vpop.f32.mrb[4].mxu0 }
 0x13c   : > { %v776_v35 = vpop.f32.mrb[5].mxu0  ;;  %v395_v39 = vadd.f32 %v729_v37, %v394_v34 }
 0x13d   : > { %v397_v36 = vpop.f32.mrb[6].mxu0 }
 0x13e   : > { %v777_v38 = vpop.f32.mrb[7].mxu0  ;;  %v403_v40 = vpack.c.bf16 %v395_v39, %v395_v39 }
 0x13f   : > { %781 = vmatmul.mubr.msk.bf16.vlgmr.msra.gmra.mrb[4].mxu1 %vm226_vm1, %v401_v21  ;;  %v599_v21 = vsub.s32 %v596_v16, %v515_v52 }
 0x140   : > { %v468_v41 = vsel %vm466_vm3, %v403_v40, 0 }
 0x141   : > { %785 = vmatpush3.bf16.msra.mxu0 %v468_v41 }
 0x212   : > { %v444_v24 = vpop.f32.mrb[4].mxu1 }
 0x213   : > { %v782_v25 = vpop.f32.mrb[5].mxu1  ;;  %v451_v26 = vsel %vm450_vm2, %v444_v24, -inf }
 0x214   : > { %452 = vmax.xlane.f32.xlu0 %v451_v26  ;;  %v447_v27 = vpop.f32.mrb[6].mxu1 }
 0x215   : > { %v783_v28 = vpop.f32.mrb[7].mxu1 }
 0x2a1   : > { %v453_v29 = vpop.xlane.xlu0 %452 }
 0x2a2   : > { %v454_v30 = vsub.f32 %v444_v24, %v453_v29 }
 0x2a4   : > { %v455_v31 = vmul.f32 1.442695, %v454_v30 }
 0x2a6   : > { %863 = vpow2.f32 %v455_v31 }
 0x2b0   : > { %v864_v32 = vpop.eup %863 }
 0x2b1   : > { %v457_v33 = vsel %vm450_vm2, %v864_v32, 0.0 }
 0x2b2   : > { %458 = vadd.xlane.f32.xlu0 %v457_v33 }
 0x33f   : > { %v459_v42 = vpop.xlane.xlu0 %458 }
 0x340   : > { %865 = vrcp.f32 %v459_v42 }
 0x34a   : > { %v866_v43 = vpop.eup %865 }
 0x34b   : > { %v461_v44 = vmul.f32 %v866_v43, %v864_v32 }
 0x34d   : > { %v462_v45 = vpack.c.bf16 %v461_v44, %v461_v44 }
 0x34f   : > { %787 = vmatmul.mubr.msk.bf16.vlgmr.msra.gmra.mrb[8].mxu0 %vm450_vm2, %v462_v45 }
 0x422   : > { %v504_v56 = vpop.f32.mrb[8].mxu0 }
 0x423   : > { %v510_v57 = vcombine.high %v504_v56, %v1001_v0  ;;  %v517_v58 = vrot.slane %v504_v56, %v516_v54  ;;  %v788_v59 = vpop.f32.mrb[9].mxu0 }
 0x424   : > { %v507_v60 = vpop.f32.mrb[10].mxu0 }
 0x425   : > { %v524_v61 = vrot.slane %v510_v57, %v516_v54  ;;  %v525_v62 = vcombine.high %v517_v58, %v1001_v0  ;;  %v789_v63 = vpop.f32.mrb[11].mxu0  ;;  %v532_v1 = vrot.slane %v517_v58, %v531_v55 }
 0x427   : > { %v547_v2 = vrot.slane %v524_v61, %v531_v55  ;;  %v555_v3 = vcombine.high %v532_v1, %v1001_v0  ;;  %v539_v4 = vrot.slane %v525_v62, %v531_v55  ;;  %v540_v5 = vcombine.high %v524_v61, %v1001_v0 }
 0x429   : > { %560 = vrot.lane.b32.xlu1 %v555_v3, %s1005_s8  ;;  %564 = vrot.lane.b32.xlu0 %v539_v4, %s1006_s9  ;;  %v557_v6 = vcombine.high %v547_v2, %v1001_v0  ;;  %v554_v7 = vrot.slane %v540_v5, %v531_v55  ;;  %v556_v8 = vcombine.high %v539_v4, %v1001_v0 }
 0x42b   : > { %v558_v9 = vcombine.high %v554_v7, %v1001_v0 }
 0x42d   : > { %572 = vrot.lane.b32.xlu1 %v557_v6, %s1005_s8 }
 0x431   : > { %576 = vrot.lane.b32.xlu1 %v554_v7, %s1006_s9 }
 0x435   : > { %568 = vrot.lane.b32.xlu1 %v556_v8, %s1007_s10 }
 0x439   : > { %580 = vrot.lane.b32.xlu1 %v558_v9, %s1007_s10 }
 0x49b   : > { %v561_v10 = vpop.permute.xlu1 %560  ;;  %v565_v18 = vpop.permute.xlu0 %564 }
 0x49c   : > { %v583_v17 = vsel %vm226_vm1, %v532_v1, %v561_v10 }
 0x49d   : > { %v585_v20 = vsel %vm584_vm4, %v583_v17, %v565_v18 }
 0x49f   : > { %v573_v11 = vpop.permute.xlu1 %572 }
 0x4a0   : > { %v588_v19 = vsel %vm226_vm1, %v547_v2, %v573_v11 }
 0x4a3   : > { %v577_v12 = vpop.permute.xlu1 %576 }
 0x4a4   : > { %v589_v0 = vsel %vm584_vm4, %v588_v19, %v577_v12 }
 0x4a7   : > { %v569_v15 = vpop.permute.xlu1 %568 }
 0x4a8   : > { %v587_v23 = vsel %vm586_vm5, %v585_v20, %v569_v15 }
 0x4ab   : > { %v581_v22 = vpop.permute.xlu1 %580 }
 0x4ac   : > { %v590_v24 = vsel %vm586_vm5, %v589_v0, %v581_v22 }
 0x4ad   : > { %v593_v25 = vcombine.low %v587_v23, %v590_v24 }
 0x4af   : > { %v600_v26 = vrot.slane %v593_v25, %v599_v21 }
 0x4b1   : > { %v607_v27 = vrot.slane %v600_v26, %v599_v21 }
 0x4b3   : > { %613 = vst.msk [vmem:[%s200_s28] sm:$0x3] %vm611_vm6, %v607_v27 }
 0x4b4   : > { %938 = shalt.err (!%p935_p7)
}
 0x4b5   : > { %s939_s30 = scalar_lea.hbm %s1227_s6, 32  ;;  %s943_s5 = scalar_lea.hbm %s1274_s3, 64 }
 0x4b6   : > { %p940_p9 = scmp.ne.s32.totalorder %s1227_s6, %s939_s30  ;;  %p944_p0 = scmp.lt.u32.totalorder %s1227_s6, %s1274_s3 }
 0x4b7   : > { %p945_p1 = scmp.lt.u32.totalorder %s943_s5, %s939_s30  ;;  %p947_p4 = scmp.lt.u32.totalorder %s939_s30, %s1227_s6 }
 0x4b8   : > { %p941_p2 = pnand %p940_p9, %p1121_p12 }
 0x4b9   : > { %p946_p11 = por %p945_p1, %p944_p0 }
 0x4ba   : > { %p942_p5 = pneg %p941_p2 }
 0x4bb   : > { %p948_p6 = por %p947_p4, %p946_p11 }
 0x4bd   : > { %p949_p8 = pnand %p948_p6, %p942_p5 }
 0x4bf   : > { %952 = shalt.err (!%p949_p8)
}
 0x4c0   : > { %796 = dma.vmem_to_hbm [thread:$0]  (%p1121_p12), %s1229_s29, 32, %s1227_s6, %s615_s7  }
 0x4c1 PF: > { %s641_s10 = sand.u32 1, %s983_s12   ;;  %p1289_p10 = scmp.ne.s32.totalorder %s1279_s19, 0 }
 0x4c2   : > { %p1290_p13 = scmp.ge.s32.totalorder %s995_s15, 2  ;;  %s642_s11 = scalar_lea.sflag [#allocation4], %s641_s10 }
 0x4c4   : > { %p807_p3 = pnand %p1290_p13, %p1289_p10 }
 0x4c6   : > { %978 = dma.done.wait (!%p807_p3), %s642_s11, 32  }
 0x4c7   : > { %980 = vsyncadd (!%p807_p3), %s642_s11, 4294967264  ;;  %p17_p7 = scmp.ge.s32.totalorder %s1086_s24, 4   ;;  %s1291_s12 = smov %s987_s13 }
 0x4c8   : > { %s1292_s13 = smov %s991_s14  ;;  %s1293_s14 = smov %s1117_s17 }
 0x4c9   : > { %s1294_s15 = smov %s1086_s24  ;;  %19 = sbr.rel (!%p17_p7) target bundleno = 6 (0x6), region = 85 }
 0x4d0   :  { %647 = vsyncpa [#allocation3], 1 }
 0x4d1   :  { %649 = vsyncpa [#allocation3 + $0x1], 1 }
 0x4d2   :  { %650 = vsyncpa [#allocation6], 1 }
 0x4d3   :  { %651 = vsyncpa [#allocation4], 1 }
 0x4d4   :  { %653 = vsyncpa [#allocation4 + $0x1], 1 }

// kernel: tpu_custom_call.1
= control target key start
LH: loop header
LB: loop body
LE: loop exit
PB: predicated region body
PF: predicated region fallthrough
CT: control target
= control target key end

     0   :  { %8 = vsyncpa [#allocation3], 0  ;;  %s1132_s0 = inlined_call_operand.hbm [shape: bf16[2,8,32], index: 0, kind: input, shape index: {}]   ;;  %s1133_s1 = inlined_call_operand.hbm [shape: bf16[3,32,32], index: 1, kind: input, shape index: {}]   ;;  %s1134_s2 = inlined_call_operand.vmem [shape: f32[3,1,32], index: 2, kind: input, shape index: {}]   ;;  %s1135_s3 = inlined_call_operand.hbm [shape: f32[2,8,32], index: 3, kind: output, shape index: {}]  }
   0x1   :  { %10 = vsyncpa [#allocation3 + $0x1], 0 }
   0x2   :  { %11 = vsyncpa [#allocation6], 0 }
   0x3   :  { %12 = vsyncpa [#allocation4], 0 }
   0x4   :  { %14 = vsyncpa [#allocation4 + $0x1], 0  ;;  %s912_s12 = smov 0   ;;  %s914_s13 = smov 0  }
   0x5   :  { %s916_s14 = smov 0   ;;  %s918_s15 = smov 0  }
   0x6 LB: > { %s933_s16 = sadd.s32 4294967295, %s883_s15   ;;  %s605_s17 = sadd.s32 4294967294, %s883_s15   ;;  %s883_s15 = sphi %s918_s15, %s1155_s15   ;;  %s879_s14 = sphi %s916_s14, %s1154_s14   ;;  %s875_s13 = sphi %s914_s13, %s1153_s13   ;;  %s871_s12 = sphi %s912_s12, %s1152_s12  }
   0x7   : > { %p40_p0 = scmp.ne.s32.totalorder %s875_s13, %s871_s12  ;;  %p1136_p1 = scmp.eq.s32.totalorder %s933_s16, 0 }
   0x8   : > { %p112_p3 = scmp.eq.s32.totalorder %s605_s17, 1  ;;  %p606_p5 = scmp.ge.s32.totalorder %s883_s15, 1 }
   0x9   : > { %p942_p4 = por %p1136_p1, %p40_p0  ;;  %p119_p7 = scmp.lt.s32.totalorder %s883_s15, 3 }
   0xa   : > { %p947_p6 = por %p112_p3, %p40_p0  ;;  %s885_s21 = smov [#allocation5]  }
   0xb   : > { %s1139_s18 = scalar_select %p942_p4, 1, 0 }
   0xc   : > { %s1140_s19 = scalar_select %p947_p6, 1, 0 }
   0xd   : > { %p952_p8 = pnand %p606_p5, %p119_p7  ;;  %s131_s22 = sshll.u32 %s885_s21, 4  ;;  %s956_s22 = int_to_ptr.vmem [resolvable:$true] %s131_s22 }
   0xe   : > { %s968_s24 = sadd.s32 1, %s883_s15   ;;  %s27_s25 = sadd.s32 1, %s879_s14 }
   0xf   : > { %s1141_s20 = scalar_select %p952_p8, 1, 0 }
  0x10   : > { %p692_p9 = pneg %p952_p8  ;;  %s24_s26 = ssub.s32 %s883_s15, %s968_s24 }
  0x11   : > { %s755_s29 = scalar_lea.hbm %s1133_s1, 768 }
  0x12   : > { %p963_p11 = pnand %p692_p9, %p1136_p1  ;;  %p756_p12 = scmp.ne.s32.totalorder %s1133_s1, %s755_s29 }
  0x13   : > { %p762_p5 = scmp.lt.u32.totalorder %s755_s29, %s1133_s1 }
  0x14   : > { %p757_p13 = pneg %p963_p11 }
  0x16   : > { %p758_p0 = pnand %p757_p13, %p756_p12 }
  0x18   : > { %p759_p3 = pneg %p758_p0 }
  0x1a   : > { %p764_p7 = pnand %p762_p5, %p759_p3 }
  0x1c   : > { %767 = shalt.err (!%p764_p7)
}
  0x1d   : > { %s768_s7 = scalar_lea.vmem %s956_s22, 768  ;;  %p776_p2 = scmp.lt.s32.totalorder %s956_s22, %s956_s22 }
  0x1e   : > { %p769_p9 = scmp.ne.s32.totalorder %s956_s22, %s768_s7  ;;  %p777_p6 = scmp.lt.s32.totalorder %s768_s7, %s768_s7 }
  0x20   : > { %p771_p10 = pnand %p769_p9, %p757_p13  ;;  %p778_p4 = por %p777_p6, %p776_p2 }
  0x22   : > { %p772_p1 = pneg %p771_p10 }
  0x24   : > { %p779_p8 = pnand %p778_p4, %p772_p1 }
  0x26   : > { %782 = shalt.err (!%p779_p8)
}
  0x27   : > { %s886_s8 = smov 64   ;;  %s887_s9 = smov 4  }
  0x28   : > { %695 = dma.hbm_to_vmem [thread:$0]  (!%p963_p11), %s1133_s1, 768, %s956_s22, [#allocation6], %s886_s8, %s886_s8, %s887_s9  }
  0x29   : > { %p25_p2 = scmp.eq.s32.totalorder %s24_s26, 0  ;;  %p34_p1 = scmp.ne.s32.totalorder %s879_s14, %s875_s13 }
  0x2a   : > { %p35_p4 = scmp.eq.s32.totalorder %s883_s15, 0  ;;  %p705_p6 = scmp.lt.s32.totalorder %s883_s15, 2 }
  0x2b   : > { %s999_s17 = scalar_select %p25_p2, %s879_s14, %s27_s25  }
  0x2c   : > { %p36_p8 = por %p35_p4, %p34_p1  ;;  %p1143_p10 = scmp.eq.s32.totalorder %s933_s16, 1 }
  0x2d   : > { %s148_s27 = sand.u32 1, %s879_s14   ;;  %s610_s28 = sshll.u32 %s883_s15, 6 }
  0x2e   : > { %p1003_p12 = por %p1143_p10, %p34_p1  ;;  %s609_s29 = sshll.u32 %s148_s27, 2 }
  0x2f   : > { %s1012_s4 = scalar_lea.hbm %s1132_s0, %s610_s28  ;;  %s152_s22 = scalar_lea.vmem [#allocation2], %s609_s29 }
  0x30   : > { %s159_s25 = sshll.u32 %s152_s22, 4  ;;  %p1014_p11 = pnand %p705_p6, %p36_p8  ;;  %s1018_s25 = int_to_ptr.vmem [resolvable:$true] %s159_s25 }
  0x31   : > { %s149_s5 = scalar_lea.sflag [#allocation3], %s148_s27  ;;  %s783_s6 = scalar_lea.hbm %s1012_s4, 64 }
  0x32   : > { %p784_p13 = scmp.ne.s32.totalorder %s1012_s4, %s783_s6  ;;  %p785_p0 = pneg %p1014_p11 }
  0x33   : > { %s788_s9 = scalar_lea.hbm %s1132_s0, 128  ;;  %p789_p7 = scmp.lt.u32.totalorder %s1012_s4, %s1132_s0 }
  0x34   : > { %p786_p3 = pnand %p785_p0, %p784_p13  ;;  %p790_p9 = scmp.lt.u32.totalorder %s788_s9, %s783_s6 }
  0x35   : > { %p792_p1 = scmp.lt.u32.totalorder %s783_s6, %s1012_s4 }
  0x36   : > { %p787_p5 = pneg %p786_p3  ;;  %p791_p2 = por %p790_p9, %p789_p7 }
  0x38   : > { %p793_p4 = por %p792_p1, %p791_p2 }
  0x3a   : > { %p794_p6 = pnand %p793_p4, %p787_p5 }
  0x3c   : > { %797 = shalt.err (!%p794_p6)
}
  0x3d   : > { %s798_s27 = scalar_lea.vmem %s1018_s25, 64  ;;  %s888_s28 = smov [#allocation2]  }
  0x3e   : > { %p799_p8 = scmp.ne.s32.totalorder %s1018_s25, %s798_s27  ;;  %s803_s29 = sshll.u32 %s888_s28, 4  ;;  %s804_s29 = int_to_ptr.vmem [resolvable:$false] %s803_s29 }
  0x3f   : > { %s805_s23 = scalar_lea.vmem %s804_s29, 128  ;;  %p806_p3 = scmp.lt.s32.totalorder %s1018_s25, %s804_s29 }
  0x40   : > { %p801_p10 = pnand %p799_p8, %p785_p0  ;;  %p807_p7 = scmp.lt.s32.totalorder %s805_s23, %s798_s27 }
  0x42   : > { %p802_p13 = pneg %p801_p10  ;;  %p808_p9 = por %p807_p7, %p806_p3 }
  0x44   : > { %p809_p2 = pnand %p808_p9, %p802_p13 }
  0x46   : > { %812 = shalt.err (!%p809_p2)
}
  0x47   : > { %699 = dma.hbm_to_vmem [thread:$0]  (!%p1014_p11), %s1012_s4, 64, %s1018_s25, %s149_s5  }
  0x48   : > { %p1146_p5 = scmp.ne.s32.totalorder %s1141_s20, 0 }
  0x49   : > { %s1048_s30 = sand.u32 (!%p1146_p5), 1, %s875_s13   ;;  %p1147_p0 = scmp.ne.s32.totalorder (!%p1146_p5), %s1139_s18, 0 }
  0x4a   : > { %168 = sbr.rel (%p1146_p5) target bundleno = 1074 (0x432), region = 32  ;;  %s612_s22 = sshll.u32 (!%p1146_p5), %s1048_s30, 2 }
  0x4b   : > { %s171_s6 = scalar_lea.sflag (!%p1146_p5), [#allocation3], %s1048_s30  ;;  %s174_s7 = scalar_lea.vmem (!%p1146_p5), [#allocation2], %s612_s22 }
  0x51   : > { %858 = dma.done.wait (%p1147_p0), %s171_s6, 64  }
  0x52   : > { %860 = vsyncadd (%p1147_p0), %s171_s6, 4294967232  ;;  %p1148_p1 = scmp.eq.s32.totalorder %s933_s16, 0 }
  0x54   : > { %862 = dma.done.wait (%p1148_p1), [#allocation6], 768   ;;  %p1149_p11 = pmov %p1148_p1 }
  0x55   : > { %v889_v0 = vmov 0.0   ;;  %vm890_vm0 = vmmov 0   ;;  %v745_v1 = vld [vmem:[#allocation5 + $0x10] sm:$0xff]   ;;  %v746_v2 = vld [vmem:[#allocation5] sm:$0xff]   ;;  %v747_v3 = vld [vmem:[#allocation5 + $0x18] sm:$0xff]   ;;  %vm226_vm1 = vcmask 261120  }
  0x56   : > { %864 = vsyncadd (%p1149_p11), [#allocation6], 4294966528  ;;  %656 = vmatprep.subr.bf16.mxu1 %v889_v0  ;;  %648 = vmatprep.subr.bf16.mxu0 %v889_v0  ;;  %v748_v4 = vld [vmem:[#allocation5 + $0x8] sm:$0xff]   ;;  %v202_v5 = vld [vmem:[%s174_s7] sm:$0xf]  ;;  %vm450_vm2 = vcmask 64512  }
  0x57   : > { %660 = vmatprep.mubr.msk.bf16.mxu1 %vm890_vm0, %v889_v0  ;;  %652 = vmatprep.mubr.msk.bf16.mxu0 %vm890_vm0, %v889_v0  ;;  %v620_v6 = vld [vmem:[%s1134_s2 + $0x1] ss:$0 sm:$0xff]  ;;  %v615_v7 = vld [vmem:[%s1134_s2] ss:$0 sm:$0xff]  ;;  %v749_v22 = vld [vmem:[#allocation5 + $0x20] sm:$0xff]   ;;  %vm466_vm3 = vcmask 1043456  }
  0x58   : > { %657 = vmatpush3.bf16.msra.mxu1 %v745_v1  ;;  %649 = vmatpush3.bf16.msra.mxu0 %v746_v2  ;;  %v750_v23 = vld [vmem:[#allocation5 + $0x28] sm:$0xff]   ;;  %v625_v37 = vld [vmem:[%s1134_s2 + $0x2] ss:$0 sm:$0xff]  ;;  %s614_s8 = sshll.u32 %s1048_s30, 3  ;;  %s632_s9 = sshll.u32 %s933_s16, 7 }
  0x59   : > { %658 = vmatprep.subr.bf16.mxu1 %v889_v0  ;;  %650 = vmatprep.subr.bf16.mxu0 %v889_v0  ;;  %s200_s10 = scalar_lea.vmem [#allocation7], %s614_s8  ;;  %s1087_s29 = scalar_lea.hbm %s1135_s3, %s632_s9 }
  0x5a   : > { %s525_s11 = sshll.u32 %s200_s10, 4  ;;  %s512_s23 = scalar_lea.sflag [#allocation4], %s1048_s30  ;;  %s1089_s11 = int_to_ptr.vmem [resolvable:$true] %s525_s11 }
  0x5b   : > { %s813_s22 = scalar_lea.vmem %s1089_s11, 128  ;;  %s891_s16 = smov [#allocation7]  }
  0x5c   : > { %659 = vmatpush3.bf16.msra.mxu1 %v747_v3  ;;  %651 = vmatpush3.bf16.msra.mxu0 %v748_v4  ;;  %p814_p4 = scmp.ne.s32.totalorder %s1089_s11, %s813_s22  ;;  %s817_s6 = sshll.u32 %s891_s16, 4  ;;  %s818_s6 = int_to_ptr.vmem [resolvable:$false] %s817_s6 }
  0x5d   : > { %672 = vmatprep.subr.bf16.mxu1 %v889_v0  ;;  %664 = vmatprep.subr.bf16.mxu0 %v889_v0  ;;  %s819_s7 = scalar_lea.vmem %s818_s6, 256  ;;  %p820_p10 = scmp.lt.s32.totalorder %s1089_s11, %s818_s6 }
  0x5e   : > { %p815_p6 = pnand %p814_p4, %p1003_p12  ;;  %p821_p13 = scmp.lt.s32.totalorder %s819_s7, %s813_s22 }
  0x5f   : > { %661 = vmatmul.mubr.msk.bf16.vlgmr.msra.gmra.mrb[0].mxu1 %vm226_vm1, %v202_v5  ;;  %653 = vmatmul.mubr.msk.bf16.vlgmr.msra.gmra.mrb[0].mxu0 %vm226_vm1, %v202_v5 }
  0x60   : > { %674 = vmatprep.mubr.msk.bf16.mxu1 %vm890_vm0, %v889_v0  ;;  %668 = vmatprep.mubr.msk.bf16.mxu0 %vm890_vm0, %v889_v0  ;;  %p816_p8 = pneg %p815_p6  ;;  %p822_p3 = por %p821_p13, %p820_p10 }
  0x61   : > { %665 = vmatpush3.bf16.msra.mxu0 %v749_v22 }
  0x62   : > { %666 = vmatprep.subr.bf16.mxu0 %v889_v0  ;;  %p823_p7 = pnand %p822_p3, %p816_p8 }
  0x65   : > { %667 = vmatpush3.bf16.msra.mxu0 %v750_v23 }
  0x66   : > { %678 = vmatprep.subr.bf16.mxu0 %v889_v0 }
  0x68   : > { %669 = vmatmul.mubr.msk.bf16.vlgmr.msra.gmra.mrb[4].mxu0 %vm226_vm1, %v202_v5 }
  0x69   : > { %680 = vmatprep.mubr.msk.bf16.mxu0 %vm890_vm0, %v889_v0 }
 0x132   : > { %v329_v8 = vpop.f32.mrb[0].mxu1  ;;  %v264_v11 = vpop.f32.mrb[0].mxu0 }
 0x133   : > { %v330_v9 = vadd.f32 %v620_v6, %v329_v8  ;;  %v662_v10 = vpop.f32.mrb[1].mxu1  ;;  %v265_v13 = vadd.f32 %v615_v7, %v264_v11  ;;  %v654_v14 = vpop.f32.mrb[1].mxu0 }
 0x134   : > { %v332_v12 = vpop.f32.mrb[2].mxu1  ;;  %v267_v17 = vpop.f32.mrb[2].mxu0 }
 0x135   : > { %v402_v15 = vpack.c.bf16 %v330_v9, %v330_v9  ;;  %v663_v16 = vpop.f32.mrb[3].mxu1  ;;  %v655_v18 = vpop.f32.mrb[3].mxu0  ;;  %v400_v20 = vmul.f32 0.17677669, %v265_v13 }
 0x137   : > { %v408_v19 = vsel %vm226_vm1, %v402_v15, 0  ;;  %v401_v21 = vpack.c.bf16 %v400_v20, %v400_v20 }
 0x138   : > { %673 = vmatpush3.bf16.xpose.msra.mxu1 %v408_v19 }
 0x13b   : > { %v394_v34 = vpop.f32.mrb[4].mxu0 }
 0x13c   : > { %v670_v35 = vpop.f32.mrb[5].mxu0  ;;  %v395_v39 = vadd.f32 %v625_v37, %v394_v34 }
 0x13d   : > { %v397_v36 = vpop.f32.mrb[6].mxu0 }
 0x13e   : > { %v671_v38 = vpop.f32.mrb[7].mxu0  ;;  %v403_v40 = vpack.c.bf16 %v395_v39, %v395_v39 }
 0x13f   : > { %675 = vmatmul.mubr.msk.bf16.vlgmr.msra.gmra.mrb[4].mxu1 %vm226_vm1, %v401_v21 }
 0x140   : > { %v468_v41 = vsel %vm466_vm3, %v403_v40, 0 }
 0x141   : > { %679 = vmatpush3.bf16.msra.mxu0 %v468_v41 }
 0x212   : > { %v444_v24 = vpop.f32.mrb[4].mxu1 }
 0x213   : > { %v676_v25 = vpop.f32.mrb[5].mxu1  ;;  %v451_v26 = vsel %vm450_vm2, %v444_v24, -inf }
 0x214   : > { %452 = vmax.xlane.f32.xlu0 %v451_v26  ;;  %v447_v27 = vpop.f32.mrb[6].mxu1 }
 0x215   : > { %v677_v28 = vpop.f32.mrb[7].mxu1 }
 0x2a1   : > { %v453_v29 = vpop.xlane.xlu0 %452 }
 0x2a2   : > { %v454_v30 = vsub.f32 %v444_v24, %v453_v29 }
 0x2a4   : > { %v455_v31 = vmul.f32 1.442695, %v454_v30 }
 0x2a6   : > { %751 = vpow2.f32 %v455_v31 }
 0x2b0   : > { %v752_v32 = vpop.eup %751 }
 0x2b1   : > { %v457_v33 = vsel %vm450_vm2, %v752_v32, 0.0 }
 0x2b2   : > { %458 = vadd.xlane.f32.xlu0 %v457_v33 }
 0x33f   : > { %v459_v42 = vpop.xlane.xlu0 %458 }
 0x340   : > { %753 = vrcp.f32 %v459_v42 }
 0x34a   : > { %v754_v43 = vpop.eup %753 }
 0x34b   : > { %v461_v44 = vmul.f32 %v754_v43, %v752_v32 }
 0x34d   : > { %v462_v45 = vpack.c.bf16 %v461_v44, %v461_v44 }
 0x34f   : > { %681 = vmatmul.mubr.msk.bf16.vlgmr.msra.gmra.mrb[8].mxu0 %vm450_vm2, %v462_v45 }
 0x422   : > { %v504_v46 = vpop.f32.mrb[8].mxu0 }
 0x423   : > { %510 = vst.msk [vmem:[%s200_s10] sm:$0xff] %vm226_vm1, %v504_v46  ;;  %v682_v47 = vpop.f32.mrb[9].mxu0 }
 0x424   : > { %v507_v48 = vpop.f32.mrb[10].mxu0 }
 0x425   : > { %826 = shalt.err (!%p823_p7)
}
 0x426   : > { %s827_s30 = scalar_lea.hbm %s1087_s29, 128  ;;  %s831_s4 = scalar_lea.hbm %s1135_s3, 256 }
 0x427   : > { %p828_p9 = scmp.ne.s32.totalorder %s1087_s29, %s827_s30  ;;  %p832_p0 = scmp.lt.u32.totalorder %s1087_s29, %s1135_s3 }
 0x428   : > { %p833_p1 = scmp.lt.u32.totalorder %s831_s4, %s827_s30  ;;  %p835_p4 = scmp.lt.u32.totalorder %s827_s30, %s1087_s29 }
 0x429   : > { %p829_p2 = pnand %p828_p9, %p1003_p12 }
 0x42a   : > { %p834_p11 = por %p833_p1, %p832_p0 }
 0x42b   : > { %p830_p5 = pneg %p829_p2 }
 0x42c   : > { %p836_p6 = por %p835_p4, %p834_p11 }
 0x42e   : > { %p837_p8 = pnand %p836_p6, %p830_p5 }
 0x430   : > { %840 = shalt.err (!%p837_p8)
}
 0x431   : > { %690 = dma.vmem_to_hbm [thread:$0]  (%p1003_p12), %s1089_s11, 128, %s1087_s29, %s512_s23   ;;  %v683_v49 = vpop.f32.mrb[11].mxu0 }
 0x432 PF: > { %s537_s5 = sand.u32 1, %s871_s12   ;;  %p1150_p10 = scmp.ne.s32.totalorder %s1140_s19, 0 }
 0x433   : > { %p1151_p13 = scmp.ge.s32.totalorder %s883_s15, 2  ;;  %s538_s8 = scalar_lea.sflag [#allocation4], %s537_s5 }
 0x435   : > { %p701_p3 = pnand %p1151_p13, %p1150_p10 }
 0x437   : > { %866 = dma.done.wait (!%p701_p3), %s538_s8, 128  }
 0x438   : > { %868 = vsyncadd (!%p701_p3), %s538_s8, 4294967168  ;;  %p17_p7 = scmp.ge.s32.totalorder %s968_s24, 4   ;;  %s1152_s12 = smov %s875_s13 }
 0x439   : > { %s1153_s13 = smov %s879_s14  ;;  %s1154_s14 = smov %s999_s17 }
 0x43a   : > { %s1155_s15 = smov %s968_s24  ;;  %19 = sbr.rel (!%p17_p7) target bundleno = 6 (0x6), region = 85 }
 0x441   :  { %543 = vsyncpa [#allocation3], 1 }
 0x442   :  { %545 = vsyncpa [#allocation3 + $0x1], 1 }
 0x443   :  { %546 = vsyncpa [#allocation6], 1 }
 0x444   :  { %547 = vsyncpa [#allocation4], 1 }
 0x445   :  { %549 = vsyncpa [#allocation4 + $0x1], 1 }

</bundles_post_ra>
